<compile_context>
chip_gen: v7x
topology: tpu7x:2x2x1
jax: 0.10.0
libtpu: 0.0.40
codegen_flags: <defaults>
</compile_context>

<pallas_src>
import math
import numpy as np
import jax
import jax.numpy as jnp
from jax.experimental import pallas as pl
from jax.experimental.pallas import tpu as pltpu

LN_EPS = 1e-5


def _layer_norm(y, w, b):
    mean = jnp.mean(y, axis=-1, keepdims=True)
    var = jnp.mean((y - mean) ** 2, axis=-1, keepdims=True)
    return (y - mean) * jax.lax.rsqrt(var + LN_EPS) * w + b


def make_fused_block_kernel(batch_per_block, seq, num_heads, embed_dim, ffn_dim):
    Bb, S, H, E, F = batch_per_block, seq, num_heads, embed_dim, ffn_dim
    Dh = E // H
    N = Bb * S

    def kernel(x_ref, wqkv_ref, wo_ref, w1_ref, w2_ref, vecs_ref, o_ref, acc_ref):
        layer = pl.program_id(1)

        # First layer of this batch block: seed the VMEM-resident activation carry.
        @pl.when(layer == 0)
        def _():
            acc_ref[...] = x_ref[...].astype(jnp.float32)

        x = acc_ref[...]                                   # (N, E), rows ordered (batch, seq)

        # ---- unpack this layer's small vectors (one (8, Wmax) slab, one DMA) ----
        vecs = vecs_ref[0].astype(jnp.float32)
        bqkv = vecs[0:1, :3 * E]
        bo   = vecs[1:2, :E]
        ln1w = vecs[2:3, :E]
        ln1b = vecs[3:4, :E]
        ln2w = vecs[4:5, :E]
        ln2b = vecs[5:6, :E]
        b1   = vecs[6:7, :F]
        b2   = vecs[7:8, :E]

        # ---- fused QKV projection (weights pre-transposed; 1/sqrt(Dh) pre-folded into q) ----
        qkv = jnp.dot(x, wqkv_ref[0].astype(jnp.float32),
                      preferred_element_type=jnp.float32) + bqkv
        q, k, v = qkv[:, 0:E], qkv[:, E:2 * E], qkv[:, 2 * E:3 * E]

        # ---- self-attention: one batched contraction over all (head, batch) pairs ----
        def to_heads(t):                                   # (N, E) -> (H*Bb, S, Dh)
            return jnp.stack([t[:, h * Dh:(h + 1) * Dh] for h in range(H)],
                             axis=0).reshape(H * Bb, S, Dh)

        qh, kh, vh = to_heads(q), to_heads(k), to_heads(v)
        s = jnp.einsum('gsd,gtd->gst', qh, kh, preferred_element_type=jnp.float32)
        s = s - jnp.max(s, axis=-1, keepdims=True)
        p = jnp.exp(s)
        # approx=True would push the reciprocal to the EUP slot but costs ~1e-3 accuracy;
        # kept exact to hold the 1e-4 tolerance against the reference.
        p = p * pl.reciprocal(jnp.sum(p, axis=-1, keepdims=True), approx=False)
        ctx = jnp.einsum('gst,gtd->gsd', p, vh,
                         preferred_element_type=jnp.float32).reshape(H, N, Dh)

        # ---- output projection folded per head (avoids a lane-dim concat of Dh-wide slices) ----
        wo_t = wo_ref[0].astype(jnp.float32)               # (E, E), pre-transposed
        attn = bo                                          # (1, E), broadcasts over rows
        for h in range(H):
            attn = attn + jnp.dot(ctx[h], wo_t[h * Dh:(h + 1) * Dh, :],
                                  preferred_element_type=jnp.float32)

        # ---- residual + LayerNorm 1 ----
        y = _layer_norm(x + attn, ln1w, ln1b)

        # ---- feed-forward (ReLU), pre-transposed weights ----
        h1 = jnp.dot(y, w1_ref[0].astype(jnp.float32),
                     preferred_element_type=jnp.float32) + b1
        h1 = jnp.maximum(h1, 0.0)
        ff = jnp.dot(h1, w2_ref[0].astype(jnp.float32),
                     preferred_element_type=jnp.float32) + b2

        # ---- residual + LayerNorm 2 ----
        z = _layer_norm(y + ff, ln2w, ln2b)

        acc_ref[...] = z                                   # carry to next layer (stays in VMEM)

        @pl.when(layer == pl.num_programs(1) - 1)
        def _():
            o_ref[...] = z.astype(o_ref.dtype)             # single HBM writeback per batch block

    return kernel


def prep_params(layer_params, num_heads):
    """Host-side, once: pre-transpose weights, fold 1/sqrt(Dh) into q, pack small vectors,
    stack everything along a layer axis."""
    E = layer_params[0]["wqkv"].shape[1]
    F = layer_params[0]["w1"].shape[0]
    Dh = E // num_heads
    scale = 1.0 / math.sqrt(Dh)
    qscale = jnp.concatenate([jnp.full((E,), scale, jnp.float32),
                              jnp.ones((2 * E,), jnp.float32)])
    Wmax = max(3 * E, F)

    def stack(fn):
        return jnp.stack([fn(p) for p in layer_params], axis=0)

    def pad(v):
        return jnp.pad(v.astype(jnp.float32), (0, Wmax - v.shape[0]))

    def pack_vecs(p):
        return jnp.stack([
            pad(p["bqkv"] * qscale),   # row 0: qkv bias (q part pre-scaled)
            pad(p["bo"]),              # row 1: out-proj bias
            pad(p["ln1w"]),            # row 2
            pad(p["ln1b"]),            # row 3
            pad(p["ln2w"]),            # row 4
            pad(p["ln2b"]),            # row 5
            pad(p["b1"]),              # row 6: FFN bias 1 (width F)
            pad(p["b2"]),              # row 7: FFN bias 2
        ], axis=0)                     # (8, Wmax)

    return dict(
        wqkv_t=stack(lambda p: p["wqkv"].T * qscale[None, :]),     # (L, E, 3E)
        wo_t=stack(lambda p: p["wo"].T),                            # (L, E, E)
        w1_t=stack(lambda p: p["w1"].T),                            # (L, E, F)
        w2_t=stack(lambda p: p["w2"].T),                            # (L, F, E)
        vecs=stack(pack_vecs),                                      # (L, 8, Wmax)
    )


def transformer_block_forward(x_sbe, prepped, num_heads, batch_blocks=1):
    S, B, E = x_sbe.shape
    L = prepped["wqkv_t"].shape[0]
    F = prepped["w1_t"].shape[2]
    Wmax = prepped["vecs"].shape[2]
    assert B % batch_blocks == 0
    Bb = B // batch_blocks
    n_blk = Bb * S

    # (S, B, E) -> (B*S, E): rows grouped per batch element so each grid block holds whole sequences.
    x2d = jnp.transpose(x_sbe, (1, 0, 2)).reshape(B * S, E)

    def w_spec(*shape):
        return pl.BlockSpec((1,) + shape, lambda bb, l: (l, 0, 0))

    in_specs = [
        pl.BlockSpec((n_blk, E), lambda bb, l: (bb, 0)),   # activation rows (DMA'd once per batch block)
        w_spec(E, 3 * E),                                  # in_proj W^T (scaled)
        w_spec(E, E),                                      # out_proj W^T
        w_spec(E, F),                                      # linear1 W^T
        w_spec(F, E),                                      # linear2 W^T
        w_spec(8, Wmax),                                   # packed biases + LN params
    ]

    out2d = pl.pallas_call(
        make_fused_block_kernel(Bb, S, num_heads, E, F),
        out_shape=jax.ShapeDtypeStruct((B * S, E), x_sbe.dtype),
        grid=(batch_blocks, L),
        in_specs=in_specs,
        out_specs=pl.BlockSpec((n_blk, E), lambda bb, l: (bb, 0)),
        scratch_shapes=[pltpu.VMEM((n_blk, E), jnp.float32)],
        compiler_params=pltpu.CompilerParams(
            dimension_semantics=("parallel", "arbitrary")),
    )(
        x2d,
        prepped["wqkv_t"], prepped["wo_t"],
        prepped["w1_t"], prepped["w2_t"],
        prepped["vecs"],
    )
    return jnp.transpose(out2d.reshape(B, S, E), (1, 0, 2))


# ---------------- pure-JAX reference (for correctness check) ----------------
def ref_encoder_layer(x_bse, p, H):
    B, S, E = x_bse.shape
    Dh = E // H
    qkv = jnp.einsum("bse,fe->bsf", x_bse, p["wqkv"]) + p["bqkv"]
    q, k, v = jnp.split(qkv, 3, axis=-1)
    q = q.reshape(B, S, H, Dh)
    k = k.reshape(B, S, H, Dh)
    v = v.reshape(B, S, H, Dh)
    scores = jnp.einsum("bshd,bthd->bhst", q, k) / math.sqrt(Dh)
    attn = jax.nn.softmax(scores, axis=-1)
    out = jnp.einsum("bhst,bthd->bshd", attn, v).reshape(B, S, E)
    out = out @ p["wo"].T + p["bo"]
    y = _layer_norm(x_bse + out, p["ln1w"], p["ln1b"])
    ff = jnp.maximum(y @ p["w1"].T + p["b1"], 0.0) @ p["w2"].T + p["b2"]
    return _layer_norm(y + ff, p["ln2w"], p["ln2b"])


def ref_forward(x_sbe, layer_params, H):
    x = jnp.transpose(x_sbe, (1, 0, 2))
    for p in layer_params:
        x = ref_encoder_layer(x, p, H)
    return jnp.transpose(x, (1, 0, 2))


# ---------------- deterministic parameter init ----------------
def init_params(key, embed_dim, num_heads, depth, mlp_ratio):
    ffn = int(embed_dim * mlp_ratio)
    layers = []
    for _ in range(depth):
        key, k0, k1, k2, k3, k4, k5 = jax.random.split(key, 7)
        layers.append(dict(
            wqkv=(jax.random.normal(k0, (3 * embed_dim, embed_dim), jnp.float32) * 0.05),
            bqkv=(jax.random.normal(k1, (3 * embed_dim,), jnp.float32) * 0.02),
            wo=(jax.random.normal(k2, (embed_dim, embed_dim), jnp.float32) * 0.05),
            bo=jnp.zeros((embed_dim,), jnp.float32),
            ln1w=jnp.ones((embed_dim,), jnp.float32),
            ln1b=jnp.zeros((embed_dim,), jnp.float32),
            ln2w=jnp.ones((embed_dim,), jnp.float32),
            ln2b=jnp.zeros((embed_dim,), jnp.float32),
            w1=(jax.random.normal(k3, (ffn, embed_dim), jnp.float32) * 0.05),
            b1=(jax.random.normal(k4, (ffn,), jnp.float32) * 0.02),
            w2=(jax.random.normal(k5, (embed_dim, ffn), jnp.float32) * 0.05),
            b2=jnp.zeros((embed_dim,), jnp.float32),
        ))
    return layers


if __name__ == "__main__":
    embed_dim, num_heads, depth, mlp_ratio = 32, 4, 2, 4.0
    seq, batch = 8, 2

    key = jax.random.PRNGKey(0)
    key, kx = jax.random.split(key)
    x = jax.random.normal(kx, (seq, batch, embed_dim), jnp.float32)   # (S, B, E), batch_first=False

    params = init_params(key, embed_dim, num_heads, depth, mlp_ratio)
    prepped = prep_params(params, num_heads)   # one-time host-side weight prep

    out = transformer_block_forward(x, prepped, num_heads)
    out = jax.block_until_ready(out)

    ref = jax.block_until_ready(ref_forward(x, params, num_heads))
    np.testing.assert_allclose(np.asarray(out), np.asarray(ref), atol=1e-4, rtol=1e-4)
    assert out.shape == (seq, batch, embed_dim)

    print("KERNEL_OK")
</pallas_src>

<mosaic_0001>
module attributes {stable_mosaic.version = 11 : i64} {
  func.func @kernel(%arg0: i32, %arg1: i32, %arg2: memref<16x32xf32, #tpu.memory_space<vmem>>, %arg3: memref<1x32x96xf32, #tpu.memory_space<vmem>>, %arg4: memref<1x32x32xf32, #tpu.memory_space<vmem>>, %arg5: memref<1x32x128xf32, #tpu.memory_space<vmem>>, %arg6: memref<1x128x32xf32, #tpu.memory_space<vmem>>, %arg7: memref<1x8x128xf32, #tpu.memory_space<vmem>>, %arg8: memref<16x32xf32, #tpu.memory_space<vmem>>, %arg9: memref<16x32xf32, #tpu.memory_space<vmem>>) attributes {dimension_semantics = [#tpu.dimension_semantics<parallel>, #tpu.dimension_semantics<arbitrary>], iteration_bounds = array<i64: 1, 2>, scalar_prefetch = 0 : i64, scratch_operands = 1 : i64, tpu.core_type = #tpu.core_type<tc>, window_params = [{transform_indices = @transform_0, window_bounds = array<i64: 16, 32>}, {transform_indices = @transform_1, window_bounds = array<i64: 1, 32, 96>}, {transform_indices = @transform_2, window_bounds = array<i64: 1, 32, 32>}, {transform_indices = @transform_3, window_bounds = array<i64: 1, 32, 128>}, {transform_indices = @transform_4, window_bounds = array<i64: 1, 128, 32>}, {transform_indices = @transform_5, window_bounds = array<i64: 1, 8, 128>}, {transform_indices = @transform_6, window_bounds = array<i64: 16, 32>}]} {
    %c0_i32 = arith.constant 0 : i32
    %0 = arith.cmpi eq, %arg1, %c0_i32 : i32
    %1 = arith.extui %0 : i1 to i32
    %c0_i32_0 = arith.constant 0 : i32
    %2 = arith.cmpi ne, %1, %c0_i32_0 : i32
    scf.if %2 {
      %c0_41 = arith.constant 0 : index
      %c0_42 = arith.constant 0 : index
      %150 = vector.load %arg2[%c0_41, %c0_42] : memref<16x32xf32, #tpu.memory_space<vmem>>, vector<16x32xf32>
      %c0_43 = arith.constant 0 : index
      %c0_44 = arith.constant 0 : index
      %151 = vector.load %arg9[%c0_43, %c0_44] : memref<16x32xf32, #tpu.memory_space<vmem>>, vector<16x32xf32>
      tpu.vector_store %arg9[%c0_43, %c0_44], %150 {strides = array<i32>} : memref<16x32xf32, #tpu.memory_space<vmem>>, vector<16x32xf32>,
    } else {
    }
    %c0 = arith.constant 0 : index
    %c0_1 = arith.constant 0 : index
    %3 = vector.load %arg9[%c0, %c0_1] : memref<16x32xf32, #tpu.memory_space<vmem>>, vector<16x32xf32>
    %c0_2 = arith.constant 0 : index
    %c0_3 = arith.constant 0 : index
    %c0_4 = arith.constant 0 : index
    %4 = vector.load %arg7[%c0_2, %c0_3, %c0_4] : memref<1x8x128xf32, #tpu.memory_space<vmem>>, vector<1x8x128xf32>
    %5 = vector.shape_cast %4 : vector<1x8x128xf32> to vector<8x128xf32>
    %6 = vector.extract_strided_slice %5 {offsets = [0, 0], sizes = [1, 96], strides = [1, 1]} : vector<8x128xf32> to vector<1x96xf32>
    %7 = vector.extract_strided_slice %5 {offsets = [1, 0], sizes = [1, 32], strides = [1, 1]} : vector<8x128xf32> to vector<1x32xf32>
    %8 = vector.extract_strided_slice %5 {offsets = [2, 0], sizes = [1, 32], strides = [1, 1]} : vector<8x128xf32> to vector<1x32xf32>
    %9 = vector.extract_strided_slice %5 {offsets = [3, 0], sizes = [1, 32], strides = [1, 1]} : vector<8x128xf32> to vector<1x32xf32>
    %10 = vector.extract_strided_slice %5 {offsets = [4, 0], sizes = [1, 32], strides = [1, 1]} : vector<8x128xf32> to vector<1x32xf32>
    %11 = vector.extract_strided_slice %5 {offsets = [5, 0], sizes = [1, 32], strides = [1, 1]} : vector<8x128xf32> to vector<1x32xf32>
    %12 = vector.extract_strided_slice %5 {offsets = [6, 0], sizes = [1, 128], strides = [1, 1]} : vector<8x128xf32> to vector<1x128xf32>
    %13 = vector.extract_strided_slice %5 {offsets = [7, 0], sizes = [1, 32], strides = [1, 1]} : vector<8x128xf32> to vector<1x32xf32>
    %c0_5 = arith.constant 0 : index
    %c0_6 = arith.constant 0 : index
    %c0_7 = arith.constant 0 : index
    %14 = vector.load %arg3[%c0_5, %c0_6, %c0_7] : memref<1x32x96xf32, #tpu.memory_space<vmem>>, vector<1x32x96xf32>
    %15 = vector.shape_cast %14 : vector<1x32x96xf32> to vector<32x96xf32>
    %cst = arith.constant dense<0.000000e+00> : vector<16x96xf32>
    %16 = tpu.matmul %3, %15, %cst {dimension_numbers = #tpu.dot_dimension_numbers<[1], [0], [0], [1], [0, 0, 1, 1], [], []>} : vector<16x32xf32>, vector<32x96xf32>, vector<16x96xf32> -> vector<16x96xf32>
    %17 = vector.broadcast %6 : vector<1x96xf32> to vector<16x96xf32>
    %18 = arith.addf %16, %17 : vector<16x96xf32>
    %19 = vector.extract_strided_slice %18 {offsets = [0, 0], sizes = [16, 32], strides = [1, 1]} : vector<16x96xf32> to vector<16x32xf32>
    %20 = vector.extract_strided_slice %18 {offsets = [0, 32], sizes = [16, 32], strides = [1, 1]} : vector<16x96xf32> to vector<16x32xf32>
    %21 = vector.extract_strided_slice %18 {offsets = [0, 64], sizes = [16, 32], strides = [1, 1]} : vector<16x96xf32> to vector<16x32xf32>
    %22 = vector.extract_strided_slice %19 {offsets = [0, 0], sizes = [16, 8], strides = [1, 1]} : vector<16x32xf32> to vector<16x8xf32>
    %23 = vector.extract_strided_slice %19 {offsets = [0, 8], sizes = [16, 8], strides = [1, 1]} : vector<16x32xf32> to vector<16x8xf32>
    %24 = vector.extract_strided_slice %19 {offsets = [0, 16], sizes = [16, 8], strides = [1, 1]} : vector<16x32xf32> to vector<16x8xf32>
    %25 = vector.extract_strided_slice %19 {offsets = [0, 24], sizes = [16, 8], strides = [1, 1]} : vector<16x32xf32> to vector<16x8xf32>
    %26 = vector.shape_cast %22 : vector<16x8xf32> to vector<1x16x8xf32>
    %27 = vector.shape_cast %23 : vector<16x8xf32> to vector<1x16x8xf32>
    %28 = vector.shape_cast %24 : vector<16x8xf32> to vector<1x16x8xf32>
    %29 = vector.shape_cast %25 : vector<16x8xf32> to vector<1x16x8xf32>
    %30 = tpu.concatenate %26, %27, %28, %29 in 0 : vector<1x16x8xf32>, vector<1x16x8xf32>, vector<1x16x8xf32>, vector<1x16x8xf32> -> vector<4x16x8xf32>
    %31 = vector.shape_cast %30 : vector<4x16x8xf32> to vector<8x8x8xf32>
    %32 = vector.extract_strided_slice %20 {offsets = [0, 0], sizes = [16, 8], strides = [1, 1]} : vector<16x32xf32> to vector<16x8xf32>
    %33 = vector.extract_strided_slice %20 {offsets = [0, 8], sizes = [16, 8], strides = [1, 1]} : vector<16x32xf32> to vector<16x8xf32>
    %34 = vector.extract_strided_slice %20 {offsets = [0, 16], sizes = [16, 8], strides = [1, 1]} : vector<16x32xf32> to vector<16x8xf32>
    %35 = vector.extract_strided_slice %20 {offsets = [0, 24], sizes = [16, 8], strides = [1, 1]} : vector<16x32xf32> to vector<16x8xf32>
    %36 = vector.shape_cast %32 : vector<16x8xf32> to vector<1x16x8xf32>
    %37 = vector.shape_cast %33 : vector<16x8xf32> to vector<1x16x8xf32>
    %38 = vector.shape_cast %34 : vector<16x8xf32> to vector<1x16x8xf32>
    %39 = vector.shape_cast %35 : vector<16x8xf32> to vector<1x16x8xf32>
    %40 = tpu.concatenate %36, %37, %38, %39 in 0 : vector<1x16x8xf32>, vector<1x16x8xf32>, vector<1x16x8xf32>, vector<1x16x8xf32> -> vector<4x16x8xf32>
    %41 = vector.shape_cast %40 : vector<4x16x8xf32> to vector<8x8x8xf32>
    %42 = vector.extract_strided_slice %21 {offsets = [0, 0], sizes = [16, 8], strides = [1, 1]} : vector<16x32xf32> to vector<16x8xf32>
    %43 = vector.extract_strided_slice %21 {offsets = [0, 8], sizes = [16, 8], strides = [1, 1]} : vector<16x32xf32> to vector<16x8xf32>
    %44 = vector.extract_strided_slice %21 {offsets = [0, 16], sizes = [16, 8], strides = [1, 1]} : vector<16x32xf32> to vector<16x8xf32>
    %45 = vector.extract_strided_slice %21 {offsets = [0, 24], sizes = [16, 8], strides = [1, 1]} : vector<16x32xf32> to vector<16x8xf32>
    %46 = vector.shape_cast %42 : vector<16x8xf32> to vector<1x16x8xf32>
    %47 = vector.shape_cast %43 : vector<16x8xf32> to vector<1x16x8xf32>
    %48 = vector.shape_cast %44 : vector<16x8xf32> to vector<1x16x8xf32>
    %49 = vector.shape_cast %45 : vector<16x8xf32> to vector<1x16x8xf32>
    %50 = tpu.concatenate %46, %47, %48, %49 in 0 : vector<1x16x8xf32>, vector<1x16x8xf32>, vector<1x16x8xf32>, vector<1x16x8xf32> -> vector<4x16x8xf32>
    %51 = vector.shape_cast %50 : vector<4x16x8xf32> to vector<8x8x8xf32>
    "tpu.trace_start"() <{level = 10 : i32, message = "gsd,gtd->gst"}> : () -> ()
    %cst_8 = arith.constant dense<0.000000e+00> : vector<8x8x8xf32>
    %52 = tpu.matmul %31, %41, %cst_8 {dimension_numbers = #tpu.dot_dimension_numbers<[2], [2], [1], [1], [0, 0, 0, 1, 1, 1], [0], [0]>} : vector<8x8x8xf32>, vector<8x8x8xf32>, vector<8x8x8xf32> -> vector<8x8x8xf32>
    "tpu.trace_stop"() : () -> ()
    %cst_9 = arith.constant dense<0xFF800000> : vector<8x8xf32>
    %53 = vector.multi_reduction <maximumf>, %52, %cst_9 [2] : vector<8x8x8xf32> to vector<8x8xf32>
    %54 = vector.shape_cast %53 : vector<8x8xf32> to vector<8x8x1xf32>
    %55 = vector.broadcast %54 : vector<8x8x1xf32> to vector<8x8x8xf32>
    %56 = arith.subf %52, %55 : vector<8x8x8xf32>
    %57 = math.exp %56 : vector<8x8x8xf32>
    %cst_10 = arith.constant dense<0.000000e+00> : vector<8x8xf32>
    %58 = vector.multi_reduction <add>, %57, %cst_10 [2] : vector<8x8x8xf32> to vector<8x8xf32>
    %59 = vector.shape_cast %58 : vector<8x8xf32> to vector<8x8x1xf32>
    %60 = tpu.reciprocal %59 : vector<8x8x1xf32> -> vector<8x8x1xf32>
    %61 = vector.broadcast %60 : vector<8x8x1xf32> to vector<8x8x8xf32>
    %62 = arith.mulf %57, %61 : vector<8x8x8xf32>
    "tpu.trace_start"() <{level = 10 : i32, message = "gst,gtd->gsd"}> : () -> ()
    %cst_11 = arith.constant dense<0.000000e+00> : vector<8x8x8xf32>
    %63 = tpu.matmul %62, %51, %cst_11 {dimension_numbers = #tpu.dot_dimension_numbers<[2], [1], [1], [2], [0, 0, 0, 1, 1, 2], [0], [0]>} : vector<8x8x8xf32>, vector<8x8x8xf32>, vector<8x8x8xf32> -> vector<8x8x8xf32>
    "tpu.trace_stop"() : () -> ()
    %64 = vector.shape_cast %63 : vector<8x8x8xf32> to vector<4x16x8xf32>
    %c0_12 = arith.constant 0 : index
    %c0_13 = arith.constant 0 : index
    %c0_14 = arith.constant 0 : index
    %65 = vector.load %arg4[%c0_12, %c0_13, %c0_14] : memref<1x32x32xf32, #tpu.memory_space<vmem>>, vector<1x32x32xf32>
    %66 = vector.shape_cast %65 : vector<1x32x32xf32> to vector<32x32xf32>
    %67 = vector.extract_strided_slice %64 {offsets = [0, 0, 0], sizes = [1, 16, 8], strides = [1, 1, 1]} : vector<4x16x8xf32> to vector<1x16x8xf32>
    %68 = vector.shape_cast %67 : vector<1x16x8xf32> to vector<16x8xf32>
    %69 = vector.extract_strided_slice %66 {offsets = [0, 0], sizes = [8, 32], strides = [1, 1]} : vector<32x32xf32> to vector<8x32xf32>
    %cst_15 = arith.constant dense<0.000000e+00> : vector<16x32xf32>
    %70 = tpu.matmul %68, %69, %cst_15 {dimension_numbers = #tpu.dot_dimension_numbers<[1], [0], [0], [1], [0, 0, 1, 1], [], []>} : vector<16x8xf32>, vector<8x32xf32>, vector<16x32xf32> -> vector<16x32xf32>
    %71 = vector.broadcast %7 : vector<1x32xf32> to vector<16x32xf32>
    %72 = arith.addf %71, %70 : vector<16x32xf32>
    %73 = vector.extract_strided_slice %64 {offsets = [1, 0, 0], sizes = [1, 16, 8], strides = [1, 1, 1]} : vector<4x16x8xf32> to vector<1x16x8xf32>
    %74 = vector.shape_cast %73 : vector<1x16x8xf32> to vector<16x8xf32>
    %75 = vector.extract_strided_slice %66 {offsets = [8, 0], sizes = [8, 32], strides = [1, 1]} : vector<32x32xf32> to vector<8x32xf32>
    %cst_16 = arith.constant dense<0.000000e+00> : vector<16x32xf32>
    %76 = tpu.matmul %74, %75, %cst_16 {dimension_numbers = #tpu.dot_dimension_numbers<[1], [0], [0], [1], [0, 0, 1, 1], [], []>} : vector<16x8xf32>, vector<8x32xf32>, vector<16x32xf32> -> vector<16x32xf32>
    %77 = arith.addf %72, %76 : vector<16x32xf32>
    %78 = vector.extract_strided_slice %64 {offsets = [2, 0, 0], sizes = [1, 16, 8], strides = [1, 1, 1]} : vector<4x16x8xf32> to vector<1x16x8xf32>
    %79 = vector.shape_cast %78 : vector<1x16x8xf32> to vector<16x8xf32>
    %80 = vector.extract_strided_slice %66 {offsets = [16, 0], sizes = [8, 32], strides = [1, 1]} : vector<32x32xf32> to vector<8x32xf32>
    %cst_17 = arith.constant dense<0.000000e+00> : vector<16x32xf32>
    %81 = tpu.matmul %79, %80, %cst_17 {dimension_numbers = #tpu.dot_dimension_numbers<[1], [0], [0], [1], [0, 0, 1, 1], [], []>} : vector<16x8xf32>, vector<8x32xf32>, vector<16x32xf32> -> vector<16x32xf32>
    %82 = arith.addf %77, %81 : vector<16x32xf32>
    %83 = vector.extract_strided_slice %64 {offsets = [3, 0, 0], sizes = [1, 16, 8], strides = [1, 1, 1]} : vector<4x16x8xf32> to vector<1x16x8xf32>
    %84 = vector.shape_cast %83 : vector<1x16x8xf32> to vector<16x8xf32>
    %85 = vector.extract_strided_slice %66 {offsets = [24, 0], sizes = [8, 32], strides = [1, 1]} : vector<32x32xf32> to vector<8x32xf32>
    %cst_18 = arith.constant dense<0.000000e+00> : vector<16x32xf32>
    %86 = tpu.matmul %84, %85, %cst_18 {dimension_numbers = #tpu.dot_dimension_numbers<[1], [0], [0], [1], [0, 0, 1, 1], [], []>} : vector<16x8xf32>, vector<8x32xf32>, vector<16x32xf32> -> vector<16x32xf32>
    %87 = arith.addf %82, %86 : vector<16x32xf32>
    %88 = arith.addf %3, %87 : vector<16x32xf32>
    %cst_19 = arith.constant dense<0.000000e+00> : vector<16xf32>
    %89 = vector.multi_reduction <add>, %88, %cst_19 [1] : vector<16x32xf32> to vector<16xf32>
    %90 = vector.shape_cast %89 : vector<16xf32> to vector<16x1xf32>
    %cst_20 = arith.constant 3.200000e+01 : f32
    %91 = vector.broadcast %cst_20 : f32 to vector<16x1xf32>
    %92 = arith.divf %90, %91 : vector<16x1xf32>
    %93 = vector.broadcast %92 : vector<16x1xf32> to vector<16x32xf32>
    %94 = arith.subf %88, %93 : vector<16x32xf32>
    %95 = arith.mulf %94, %94 : vector<16x32xf32>
    %cst_21 = arith.constant dense<0.000000e+00> : vector<16xf32>
    %96 = vector.multi_reduction <add>, %95, %cst_21 [1] : vector<16x32xf32> to vector<16xf32>
    %97 = vector.shape_cast %96 : vector<16xf32> to vector<16x1xf32>
    %cst_22 = arith.constant 3.200000e+01 : f32
    %98 = vector.broadcast %cst_22 : f32 to vector<16x1xf32>
    %99 = arith.divf %97, %98 : vector<16x1xf32>
    %100 = vector.broadcast %92 : vector<16x1xf32> to vector<16x32xf32>
    %101 = arith.subf %88, %100 : vector<16x32xf32>
    %cst_23 = arith.constant 9.99999974E-6 : f32
    %102 = vector.broadcast %cst_23 : f32 to vector<16x1xf32>
    %103 = arith.addf %99, %102 : vector<16x1xf32>
    %104 = math.rsqrt %103 : vector<16x1xf32>
    %105 = vector.broadcast %104 : vector<16x1xf32> to vector<16x32xf32>
    %106 = arith.mulf %101, %105 : vector<16x32xf32>
    %107 = vector.broadcast %8 : vector<1x32xf32> to vector<16x32xf32>
    %108 = arith.mulf %106, %107 : vector<16x32xf32>
    %109 = vector.broadcast %9 : vector<1x32xf32> to vector<16x32xf32>
    %110 = arith.addf %108, %109 : vector<16x32xf32>
    %c0_24 = arith.constant 0 : index
    %c0_25 = arith.constant 0 : index
    %c0_26 = arith.constant 0 : index
    %111 = vector.load %arg5[%c0_24, %c0_25, %c0_26] : memref<1x32x128xf32, #tpu.memory_space<vmem>>, vector<1x32x128xf32>
    %112 = vector.shape_cast %111 : vector<1x32x128xf32> to vector<32x128xf32>
    %cst_27 = arith.constant dense<0.000000e+00> : vector<16x128xf32>
    %113 = tpu.matmul %110, %112, %cst_27 {dimension_numbers = #tpu.dot_dimension_numbers<[1], [0], [0], [1], [0, 0, 1, 1], [], []>} : vector<16x32xf32>, vector<32x128xf32>, vector<16x128xf32> -> vector<16x128xf32>
    %114 = vector.broadcast %12 : vector<1x128xf32> to vector<16x128xf32>
    %115 = arith.addf %113, %114 : vector<16x128xf32>
    %cst_28 = arith.constant 0.000000e+00 : f32
    %116 = vector.broadcast %cst_28 : f32 to vector<16x128xf32>
    %117 = arith.maximumf %115, %116 : vector<16x128xf32>
    %c0_29 = arith.constant 0 : index
    %c0_30 = arith.constant 0 : index
    %c0_31 = arith.constant 0 : index
    %118 = vector.load %arg6[%c0_29, %c0_30, %c0_31] : memref<1x128x32xf32, #tpu.memory_space<vmem>>, vector<1x128x32xf32>
    %119 = vector.shape_cast %118 : vector<1x128x32xf32> to vector<128x32xf32>
    %cst_32 = arith.constant dense<0.000000e+00> : vector<16x32xf32>
    %120 = tpu.matmul %117, %119, %cst_32 {dimension_numbers = #tpu.dot_dimension_numbers<[1], [0], [0], [1], [0, 0, 1, 1], [], []>} : vector<16x128xf32>, vector<128x32xf32>, vector<16x32xf32> -> vector<16x32xf32>
    %121 = vector.broadcast %13 : vector<1x32xf32> to vector<16x32xf32>
    %122 = arith.addf %120, %121 : vector<16x32xf32>
    %123 = arith.addf %110, %122 : vector<16x32xf32>
    %cst_33 = arith.constant dense<0.000000e+00> : vector<16xf32>
    %124 = vector.multi_reduction <add>, %123, %cst_33 [1] : vector<16x32xf32> to vector<16xf32>
    %125 = vector.shape_cast %124 : vector<16xf32> to vector<16x1xf32>
    %cst_34 = arith.constant 3.200000e+01 : f32
    %126 = vector.broadcast %cst_34 : f32 to vector<16x1xf32>
    %127 = arith.divf %125, %126 : vector<16x1xf32>
    %128 = vector.broadcast %127 : vector<16x1xf32> to vector<16x32xf32>
    %129 = arith.subf %123, %128 : vector<16x32xf32>
    %130 = arith.mulf %129, %129 : vector<16x32xf32>
    %cst_35 = arith.constant dense<0.000000e+00> : vector<16xf32>
    %131 = vector.multi_reduction <add>, %130, %cst_35 [1] : vector<16x32xf32> to vector<16xf32>
    %132 = vector.shape_cast %131 : vector<16xf32> to vector<16x1xf32>
    %cst_36 = arith.constant 3.200000e+01 : f32
    %133 = vector.broadcast %cst_36 : f32 to vector<16x1xf32>
    %134 = arith.divf %132, %133 : vector<16x1xf32>
    %135 = vector.broadcast %127 : vector<16x1xf32> to vector<16x32xf32>
    %136 = arith.subf %123, %135 : vector<16x32xf32>
    %cst_37 = arith.constant 9.99999974E-6 : f32
    %137 = vector.broadcast %cst_37 : f32 to vector<16x1xf32>
    %138 = arith.addf %134, %137 : vector<16x1xf32>
    %139 = math.rsqrt %138 : vector<16x1xf32>
    %140 = vector.broadcast %139 : vector<16x1xf32> to vector<16x32xf32>
    %141 = arith.mulf %136, %140 : vector<16x32xf32>
    %142 = vector.broadcast %10 : vector<1x32xf32> to vector<16x32xf32>
    %143 = arith.mulf %141, %142 : vector<16x32xf32>
    %144 = vector.broadcast %11 : vector<1x32xf32> to vector<16x32xf32>
    %145 = arith.addf %143, %144 : vector<16x32xf32>
    %c0_38 = arith.constant 0 : index
    %c0_39 = arith.constant 0 : index
    %146 = vector.load %arg9[%c0_38, %c0_39] : memref<16x32xf32, #tpu.memory_space<vmem>>, vector<16x32xf32>
    tpu.vector_store %arg9[%c0_38, %c0_39], %145 {strides = array<i32>} : memref<16x32xf32, #tpu.memory_space<vmem>>, vector<16x32xf32>,
    %c1_i32 = arith.constant 1 : i32
    %147 = arith.cmpi eq, %arg1, %c1_i32 : i32
    %148 = arith.extui %147 : i1 to i32
    %c0_i32_40 = arith.constant 0 : i32
    %149 = arith.cmpi ne, %148, %c0_i32_40 : i32
    scf.if %149 {
      %c0_41 = arith.constant 0 : index
      %c0_42 = arith.constant 0 : index
      %150 = vector.load %arg8[%c0_41, %c0_42] : memref<16x32xf32, #tpu.memory_space<vmem>>, vector<16x32xf32>
      tpu.vector_store %arg8[%c0_41, %c0_42], %145 {strides = array<i32>} : memref<16x32xf32, #tpu.memory_space<vmem>>, vector<16x32xf32>,
    } else {
    }
    return
  }
  func.func @transform_0(%arg0: i32, %arg1: i32) -> (i32, i32) {
    %c0_i32 = arith.constant 0 : i32
    %c0_i32_0 = arith.constant 0 : i32
    return %arg0, %c0_i32 : i32, i32
  }
  func.func @transform_1(%arg0: i32, %arg1: i32) -> (i32, i32, i32) {
    %c0_i32 = arith.constant 0 : i32
    %c0_i32_0 = arith.constant 0 : i32
    %c0_i32_1 = arith.constant 0 : i32
    return %arg1, %c0_i32, %c0_i32_0 : i32, i32, i32
  }
  func.func @transform_2(%arg0: i32, %arg1: i32) -> (i32, i32, i32) {
    %c0_i32 = arith.constant 0 : i32
    %c0_i32_0 = arith.constant 0 : i32
    %c0_i32_1 = arith.constant 0 : i32
    return %arg1, %c0_i32, %c0_i32_0 : i32, i32, i32
  }
  func.func @transform_3(%arg0: i32, %arg1: i32) -> (i32, i32, i32) {
    %c0_i32 = arith.constant 0 : i32
    %c0_i32_0 = arith.constant 0 : i32
    %c0_i32_1 = arith.constant 0 : i32
    return %arg1, %c0_i32, %c0_i32_0 : i32, i32, i32
  }
  func.func @transform_4(%arg0: i32, %arg1: i32) -> (i32, i32, i32) {
    %c0_i32 = arith.constant 0 : i32
    %c0_i32_0 = arith.constant 0 : i32
    %c0_i32_1 = arith.constant 0 : i32
    return %arg1, %c0_i32, %c0_i32_0 : i32, i32, i32
  }
  func.func @transform_5(%arg0: i32, %arg1: i32) -> (i32, i32, i32) {
    %c0_i32 = arith.constant 0 : i32
    %c0_i32_0 = arith.constant 0 : i32
    %c0_i32_1 = arith.constant 0 : i32
    return %arg1, %c0_i32, %c0_i32_0 : i32, i32, i32
  }
  func.func @transform_6(%arg0: i32, %arg1: i32) -> (i32, i32) {
    %c0_i32 = arith.constant 0 : i32
    %c0_i32_0 = arith.constant 0 : i32
    return %arg0, %c0_i32 : i32, i32
  }
}

</mosaic_0001>

<bundles_post_ra>
// kernel: tpu_custom_call.1
= control target key start
LH: loop header
LB: loop body
LE: loop exit
PB: predicated region body
PF: predicated region fallthrough
CT: control target
= control target key end

     0   :  { %11 = vsyncpa [#allocation4], 0  ;;  %s3042_s21 = smov 0   ;;  %s3044_s22 = smov 0   ;;  %s3371_s0 = inlined_call_operand.vmem [shape: f32[16,32], index: 0, kind: input, shape index: {}]   ;;  %s3372_s1 = inlined_call_operand.vmem [shape: f32[2,32,96], index: 1, kind: input, shape index: {}]   ;;  %s3373_s2 = inlined_call_operand.vmem [shape: f32[2,32,32], index: 2, kind: input, shape index: {}]   ;;  %s3374_s3 = inlined_call_operand.vmem [shape: f32[2,32,128], index: 3, kind: input, shape index: {}]   ;;  %s3375_s4 = inlined_call_operand.vmem [shape: f32[2,128,32], index: 4, kind: input, shape index: {}]   ;;  %s3376_s5 = inlined_call_operand.vmem [shape: f32[2,8,128], index: 5, kind: input, shape index: {}]   ;;  %s3377_s6 = inlined_call_operand.hbm [shape: f32[16,32], index: 6, kind: output, shape index: {}]  }
   0x1   :  { %s3046_s23 = smov 0  }
   0x2 LB: > { %s2516_s24 = sadd.s32 4294967295, %s2995_s23   ;;  %s26_s25 = sadd.s32 1, %s2991_s22  ;;  %s2995_s23 = sphi %s3046_s23, %s17_s23   ;;  %s2991_s22 = sphi %s3044_s22, %s3380_s22   ;;  %s2987_s21 = sphi %s3042_s21, %s3379_s21  }
   0x3   : > { %p27_p0 = scmp.ge.s32.totalorder %s26_s25, 2  ;;  %p2520_p1 = scmp.ge.s32.totalorder %s2995_s23, 1 }
   0x4   : > { %p275_p2 = scmp.lt.s32.totalorder %s2995_s23, 3 }
   0x5   : > { %s3382_s25 = smov (%p27_p0, %s26_s25), 0 }
   0x6   : > { %p276_p3 = pnand %p2520_p1, %p275_p2 }
   0x7   : > { %p330_p4 = scmp.lt.s32.totalorder (!%p276_p3), %s2987_s21, 1  ;;  %p2530_p5 = scmp.ne.s32.totalorder (!%p276_p3), %s2987_s21, 0 }
   0x8   : > { %279 = sbr.rel (%p276_p3) target bundleno = 2595 (0xa23), region = 44 }
   0xf   : > { %s331_s26 = scalar_select %p330_p4, %s2987_s21, 1 }
  0x10   : > { %358 = sbr.rel (%p2530_p5) target bundleno = 23 (0x17), region = 48  ;;  %v359_v0 = vld [vmem:[%s3371_s0] sm:$0xff] (!%p2530_p5)  ;;  %vm361_vm0 = vcmask (!%p2530_p5), 261120   ;;  %v360_v1 = vld [vmem:[%s3371_s0 + $0x8] sm:$0xff] (!%p2530_p5) }
  0x11   : > { %s2572_s27 = sshll.u32 %s331_s26, 5  ;;  %s2575_s28 = sshll.u32 %s331_s26, 7  ;;  %362 = vst.msk [vmem:[#allocation2] sm:$0xff] (!%p2530_p5), %vm361_vm0, %v359_v0  ;;  %363 = vst.msk [vmem:[#allocation2 + $0x8] sm:$0xff] (!%p2530_p5), %vm361_vm0, %v360_v1 }
  0x12   : > { %s334_s7 = scalar_lea.vmem %s3372_s1, %s2572_s27  ;;  %s3071_s10 = scalar_lea.vmem %s3373_s2, %s2572_s27 }
  0x13   : > { %s3076_s13 = scalar_lea.vmem %s3374_s3, %s2572_s27  ;;  %s3081_s16 = scalar_lea.vmem %s3375_s4, %s2575_s28 }
  0x14   : > { %s2529_s17 = sshll.u32 %s331_s26, 3 }
  0x15   : > { %s353_s20 = scalar_lea.vmem %s3376_s5, %s2529_s17 }
  0x17 PF: > { %v367_v2 = vld [vmem:[%s334_s7] sm:$0xff]  ;;  %v368_v3 = vld [vmem:[%s334_s7 + $0x8] sm:$0xff]  ;;  %v369_v4 = vld [vmem:[%s334_s7 + $0x10] sm:$0xff]  ;;  %vm375_vm1 = vcmask 261120   ;;  %v371_v10 = vlaneseq  ;;  %v2997_v16 = vmov 0.0   ;;  %s2998_s26 = smov 112  }
  0x18   : > { %v2807_v5 = vpack.c.bf16 %v368_v3, %v367_v2  ;;  %v370_v6 = vld [vmem:[%s334_s7 + $0x18] sm:$0xff]  ;;  %v3093_v7 = vld [vmem:[#allocation2] sm:$0xff]  ;;  %v3097_v9 = vld [vmem:[#allocation2 + $0x8] sm:$0xff]  ;;  %2666 = vmatprep.subr.mxu1 %v2997_v16  ;;  %s2999_s28 = smov 120   ;;  %vm3000_vm2 = vmmov 0   ;;  %s3001_s7 = smov 104  }
  0x19   : > { %v2811_v8 = vpack.c.bf16 %v370_v6, %v369_v4  ;;  %2658 = vmatprep.mubr.msk.f32.mxu0 %vm375_vm1, %v3093_v7  ;;  %v3101_v11 = vshrl.u32 %v371_v10, 7  ;;  %v3104_v13 = vld [vmem:[%s353_s20] sm:$0xff]  ;;  %2668 = vmatprep.mubr.msk.f32.mxu1 %vm3000_vm2, %v2997_v16  ;;  %s3002_s9 = smov 96   ;;  %vm473_vm3 = vcmask 64512   ;;  %s3003_s11 = smov 64  }
  0x1a   : > { %2808 = vmatprep.subr.bf16.mxu0 %v2807_v5  ;;  %p2567_p6 = scmp.ne.s32.totalorder %s2987_s21, 1 }
  0x1b   : > { %2810 = vmatpush3.bf16.msra.mxu0 %v2807_v5  ;;  %v373_v12 = vsub.s32 0, %v3101_v11 }
  0x1c   : > { %2812 = vmatprep.subr.bf16.mxu0 %v2811_v8 }
  0x1d   : > { %v374_v14 = vrot.slane %v3104_v13, %v373_v12 }
  0x1f   : > { %2814 = vmatpush3.bf16.msra.mxu0 %v2811_v8 }
  0x20   : > { %2661 = vmatprep.subr.mxu0 %v2997_v16 }
  0x22   : > { %2659 = vmatmul.mubr.msk.f32.vlgmr.msra.gmra.mrb[0].mxu0 %vm375_vm1, %v3097_v9 }
  0x23   : > { %2663 = vmatprep.mubr.msk.f32.mxu0 %vm3000_vm2, %v2997_v16 }
  0xf5   : > { %v2660_v15 = vpop.f32.mrb[0].mxu0 }
  0xf6   : > { %v448_v17 = vpop.f32.mrb[1].mxu0  ;;  %v3113_v19 = vadd.f32 %v2660_v15, %v374_v14 }
  0xf7   : > { %v449_v18 = vadd.f32 %v448_v17, %v374_v14 }
  0xf9   : > { %463 = vrot.lane.b32.xlu1 %v449_v18, %s2998_s26  ;;  %459 = vrot.lane.b32.xlu0 %v449_v18, %s2999_s28 }
  0xfd   : > { %465 = vrot.lane.b32.xlu1 %v3113_v19, %s2998_s26  ;;  %461 = vrot.lane.b32.xlu0 %v3113_v19, %s2999_s28 }
 0x101   : > { %469 = vrot.lane.b32.xlu1 %v3113_v19, %s3001_s7  ;;  %467 = vrot.lane.b32.xlu0 %v449_v18, %s3001_s7 }
 0x105   : > { %548 = vrot.lane.b32.xlu1 %v3113_v19, %s3002_s9  ;;  %471 = vrot.lane.b32.xlu0 %v449_v18, %s3002_s9 }
 0x16b   : > { %v3119_v20 = vpop.permute.xlu1 %463  ;;  %v3121_v21 = vpop.permute.xlu0 %459 }
 0x16c   : > { %624 = vrot.lane.b32.xlu0 %v3121_v21, %s3002_s9 }
 0x16f   : > { %v3124_v22 = vpop.permute.xlu1 %465  ;;  %v3126_v23 = vpop.permute.xlu0 %461 }
 0x170   : > { %776 = vrot.lane.b32.xlu0 %v3119_v20, %s3002_s9  ;;  %700 = vrot.lane.b32.xlu1 %v3126_v23, %s3002_s9 }
 0x173   : > { %v3130_v24 = vpop.permute.xlu1 %469  ;;  %v3132_v25 = vpop.permute.xlu0 %467 }
 0x174   : > { %852 = vrot.lane.b32.xlu1 %v3124_v22, %s3002_s9  ;;  %928 = vrot.lane.b32.xlu0 %v3132_v25, %s3002_s9 }
 0x177   : > { %v549_v26 = vpop.permute.xlu1 %548  ;;  %v472_v27 = vpop.permute.xlu0 %471 }
 0x178   : > { %2667 = vmatpush3.xpose.msk.msra.mxu1 %vm473_vm3, %v549_v26  ;;  %1004 = vrot.lane.b32.xlu1 %v3130_v24, %s3002_s9 }
 0x179   : > { %2662 = vmatpush3.xpose.msk.msra.mxu0 %vm473_vm3, %v472_v27  ;;  %2676 = vmatprep.subr.mxu1 %v2997_v16 }
 0x17a   : > { %2671 = vmatprep.subr.mxu0 %v2997_v16 }
 0x17b   : > { %2669 = vmatmul.mubr.msk.f32.vlgmr.msra.gmra.mrb[0].mxu1 %vm473_vm3, %v3113_v19 }
 0x17c   : > { %2664 = vmatmul.mubr.msk.f32.vlgmr.msra.gmra.mrb[2].mxu0 %vm473_vm3, %v449_v18  ;;  %1168 = vrot.lane.b32.xlu1 %v449_v18, %s3003_s11 }
 0x17d   : > { %2673 = vmatprep.mubr.msk.f32.mxu0 %vm3000_vm2, %v2997_v16  ;;  %2678 = vmatprep.mubr.msk.f32.mxu1 %vm3000_vm2, %v2997_v16 }
 0x1de   : > { %v625_v28 = vpop.permute.xlu0 %624 }
 0x1df   : > { %2672 = vmatpush3.xpose.msk.msra.mxu0 %vm473_vm3, %v625_v28 }
 0x1e0   : > { %2681 = vmatprep.subr.mxu0 %v2997_v16 }
 0x1e2   : > { %v701_v29 = vpop.permute.xlu1 %700  ;;  %2674 = vmatmul.mubr.msk.f32.vlgmr.msra.gmra.mrb[4].mxu0 %vm473_vm3, %v3121_v21  ;;  %v777_v30 = vpop.permute.xlu0 %776 }
 0x1e3   : > { %2677 = vmatpush3.xpose.msk.msra.mxu1 %vm473_vm3, %v701_v29  ;;  %2682 = vmatpush3.xpose.msk.msra.mxu0 %vm473_vm3, %v777_v30 }
 0x1e4   : > { %2683 = vmatprep.mubr.msk.f32.mxu0 %vm3000_vm2, %v2997_v16  ;;  %2686 = vmatprep.subr.mxu1 %v2997_v16 }
 0x1e5   : > { %2691 = vmatprep.subr.mxu0 %v2997_v16 }
 0x1e6   : > { %2679 = vmatmul.mubr.msk.f32.vlgmr.msra.gmra.mrb[2].mxu1 %vm473_vm3, %v3126_v23  ;;  %v853_v31 = vpop.permute.xlu1 %852  ;;  %2684 = vmatmul.mubr.msk.f32.vlgmr.msra.gmra.mrb[6].mxu0 %vm473_vm3, %v3119_v20  ;;  %v929_v32 = vpop.permute.xlu0 %928 }
 0x1e7   : > { %2687 = vmatpush3.xpose.msk.msra.mxu1 %vm473_vm3, %v853_v31  ;;  %2692 = vmatpush3.xpose.msk.msra.mxu0 %vm473_vm3, %v929_v32 }
 0x1e8   : > { %2688 = vmatprep.mubr.msk.f32.mxu1 %vm3000_vm2, %v2997_v16  ;;  %2693 = vmatprep.mubr.msk.f32.mxu0 %vm3000_vm2, %v2997_v16 }
 0x1e9   : > { %2696 = vmatprep.subr.mxu1 %v2997_v16  ;;  %2701 = vmatprep.subr.mxu0 %v2997_v16 }
 0x1ea   : > { %2689 = vmatmul.mubr.msk.f32.vlgmr.msra.gmra.mrb[4].mxu1 %vm473_vm3, %v3124_v22  ;;  %v1005_v33 = vpop.permute.xlu1 %1004  ;;  %2694 = vmatmul.mubr.msk.f32.vlgmr.msra.gmra.mrb[8].mxu0 %vm473_vm3, %v3132_v25 }
 0x1eb   : > { %2697 = vmatpush3.xpose.msk.msra.mxu1 %vm473_vm3, %v1005_v33  ;;  %2698 = vmatprep.mubr.msk.f32.mxu1 %vm3000_vm2, %v2997_v16 }
 0x1ec   : > { %2706 = vmatprep.subr.mxu1 %v2997_v16  ;;  %2703 = vmatprep.mubr.msk.f32.mxu0 %vm3000_vm2, %v2997_v16 }
 0x1ee   : > { %2699 = vmatmul.mubr.msk.f32.vlgmr.msra.gmra.mrb[6].mxu1 %vm473_vm3, %v3130_v24  ;;  %v1169_v34 = vpop.permute.xlu1 %1168 }
 0x1ef   : > { %2702 = vmatpush3.msra.mxu0 %v1169_v34  ;;  %2708 = vmatprep.mubr.msk.f32.mxu1 %vm3000_vm2, %v2997_v16 }
 0x1f0   : > { %2711 = vmatprep.subr.mxu0 %v2997_v16 }
 0x24e   : > { %v620_v35 = vpop.f32.mrb[0].mxu1 }
 0x24f   : > { %v544_v36 = vpop.f32.mrb[2].mxu0  ;;  %v2670_v37 = vpop.f32.mrb[1].mxu1  ;;  %v1083_v38 = vsel %vm473_vm3, %v620_v35, -inf }
 0x250   : > { %v2665_v39 = vpop.f32.mrb[3].mxu0  ;;  %1084 = vmax.xlane.f32.xlu1 %v1083_v38  ;;  %v1080_v40 = vsel %vm473_vm3, %v544_v36, -inf }
 0x251   : > { %1081 = vmax.xlane.f32.xlu0 %v1080_v40 }
 0x2b5   : > { %v696_v41 = vpop.f32.mrb[4].mxu0 }
 0x2b6   : > { %v2675_v42 = vpop.f32.mrb[5].mxu0  ;;  %v1086_v53 = vsel %vm473_vm3, %v696_v41, -inf }
 0x2b9   : > { %v772_v43 = vpop.f32.mrb[2].mxu1  ;;  %v848_v44 = vpop.f32.mrb[6].mxu0 }
 0x2ba   : > { %v2680_v45 = vpop.f32.mrb[3].mxu1  ;;  %v2685_v46 = vpop.f32.mrb[7].mxu0  ;;  %v1089_v47 = vsel %vm473_vm3, %v772_v43, -inf  ;;  %v1092_v48 = vsel %vm473_vm3, %v848_v44, -inf }
 0x2bb   : > { %1090 = vmax.xlane.f32.xlu0 %v1089_v47  ;;  %1093 = vmax.xlane.f32.xlu1 %v1092_v48 }
 0x2bd   : > { %v924_v49 = vpop.f32.mrb[4].mxu1  ;;  %v3190_v50 = vpop.f32.mrb[8].mxu0 }
 0x2be   : > { %v2690_v51 = vpop.f32.mrb[5].mxu1  ;;  %v2695_v52 = vpop.f32.mrb[9].mxu0  ;;  %v1095_v56 = vsel %vm473_vm3, %v924_v49, -inf  ;;  %v1098_v61 = vsel %vm473_vm3, %v3190_v50, -inf }
 0x2bf   : > { %1087 = vmax.xlane.f32.xlu0 %v1086_v53 }
 0x2c1   : > { %v1076_v54 = vpop.f32.mrb[6].mxu1 }
 0x2c2   : > { %v2700_v55 = vpop.f32.mrb[7].mxu1  ;;  %v1101_v57 = vsel %vm473_vm3, %v1076_v54, -inf }
 0x2c3   : > { %1096 = vmax.xlane.f32.xlu0 %v1095_v56 }
 0x2c7   : > { %1102 = vmax.xlane.f32.xlu0 %v1101_v57 }
 0x2cc   : > { %1320 = vrot.lane.b32.xlu1 %v3121_v21, %s3003_s11 }
 0x2dd   : > { %1244 = vrot.lane.b32.xlu0 %v3113_v19, %s3003_s11  ;;  %v1085_v58 = vpop.xlane.xlu1 %1084 }
 0x2de   : > { %v1105_v59 = vsub.f32 %v620_v35, %v1085_v58  ;;  %v1082_v0 = vpop.xlane.xlu0 %1081 }
 0x2df   : > { %v1104_v1 = vsub.f32 %v544_v36, %v1082_v0 }
 0x2e0   : > { %v1114_v60 = vmul.f32 1.442695, %v1105_v59 }
 0x2e1   : > { %v1112_v2 = vmul.f32 1.442695, %v1104_v1 }
 0x2e2   : > { %2903 = vpow2.f32 %v1114_v60 }
 0x2e3   : > { %2905 = vpow2.f32 %v1112_v2 }
 0x2ec   : > { %v2904_v62 = vpop.eup %2903 }
 0x2ed   : > { %v1131_v63 = vsel %vm473_vm3, %v2904_v62, 0.0  ;;  %v3204_v3 = vpop.eup %2905 }
 0x2ee   : > { %v1128_v4 = vsel %vm473_vm3, %v3204_v3, 0.0 }
 0x2f0   : > { %1099 = vmax.xlane.f32.xlu1 %v1098_v61 }
 0x2fc   : > { %1132 = vadd.xlane.f32.xlu0 %v1131_v63  ;;  %v1776_v63 = vld [vmem:[%s3071_s10] sm:$0xff] }
 0x301   : > { %1396 = vrot.lane.b32.xlu1 %v3126_v23, %s3003_s11 }
 0x325   : > { %1129 = vadd.xlane.f32.xlu1 %v1128_v4 }
 0x336   : > { %1548 = vrot.lane.b32.xlu1 %v3124_v22, %s3003_s11 }
 0x348   : > { %v1094_v5 = vpop.xlane.xlu1 %1093  ;;  %v1091_v6 = vpop.xlane.xlu0 %1090 }
 0x349   : > { %v1107_v8 = vsub.f32 %v772_v43, %v1091_v6  ;;  %v1108_v10 = vsub.f32 %v848_v44, %v1094_v5 }
 0x34b   : > { %v1118_v12 = vmul.f32 1.442695, %v1107_v8  ;;  %v1120_v17 = vmul.f32 1.442695, %v1108_v10  ;;  %v1777_v10 = vld [vmem:[%s3071_s10 + $0x8] sm:$0xff] }
 0x34c   : > { %v1088_v14 = vpop.xlane.xlu0 %1087  ;;  %v1321_v31 = vpop.permute.xlu1 %1320 }
 0x34d   : > { %v1106_v15 = vsub.f32 %v696_v41, %v1088_v14  ;;  %2907 = vpow2.f32 %v1118_v12 }
 0x34f   : > { %v1116_v18 = vmul.f32 1.442695, %v1106_v15 }
 0x350   : > { %v1097_v19 = vpop.xlane.xlu0 %1096 }
 0x351   : > { %2909 = vpow2.f32 %v1116_v18  ;;  %v1109_v32 = vsub.f32 %v924_v49, %v1097_v19  ;;  %v1778_v18 = vld [vmem:[%s3071_s10 + $0x10] sm:$0xff] }
 0x352   : > { %2911 = vpow2.f32 %v1120_v17 }
 0x353   : > { %v1122_v33 = vmul.f32 1.442695, %v1109_v32 }
 0x354   : > { %v1103_v21 = vpop.xlane.xlu0 %1102 }
 0x355   : > { %v1111_v34 = vsub.f32 %v1076_v54, %v1103_v21  ;;  %2913 = vpow2.f32 %v1122_v33 }
 0x357   : > { %v2908_v23 = vpop.eup %2907  ;;  %v1126_v38 = vmul.f32 1.442695, %v1111_v34  ;;  %v1863_v34 = vsub.s32 1, %v3101_v11 }
 0x358   : > { %v1245_v26 = vpop.permute.xlu0 %1244  ;;  %v1137_v27 = vsel %vm473_vm3, %v2908_v23, 0.0 }
 0x359   : > { %2707 = vmatpush3.msra.mxu1 %v1245_v26  ;;  %1138 = vadd.xlane.f32.xlu0 %v1137_v27  ;;  %v1779_v26 = vld [vmem:[%s3071_s10 + $0x18] sm:$0xff] }
 0x35a   : > { %2716 = vmatprep.subr.mxu1 %v2997_v16 }
 0x35b   : > { %v2910_v22 = vpop.eup %2909 }
 0x35c   : > { %v1134_v28 = vsel %vm473_vm3, %v2910_v22, 0.0  ;;  %v3213_v29 = vpop.eup %2911 }
 0x35d   : > { %1135 = vadd.xlane.f32.xlu1 %v1134_v28  ;;  %v1140_v30 = vsel %vm473_vm3, %v3213_v29, 0.0 }
 0x35f   : > { %v3220_v40 = vpop.eup %2913 }
 0x361   : > { %1141 = vadd.xlane.f32.xlu1 %v1140_v30 }
 0x36f   : > { %1472 = vrot.lane.b32.xlu0 %v3119_v20, %s3003_s11  ;;  %v1143_v20 = vsel %vm473_vm3, %v3220_v40, 0.0 }
 0x37d   : > { %v1100_v35 = vpop.xlane.xlu1 %1099 }
 0x37e   : > { %v1110_v36 = vsub.f32 %v3190_v50, %v1100_v35  ;;  %v1864_v35 = vrot.slane %v3104_v13, %v1863_v34 }
 0x380   : > { %v1124_v37 = vmul.f32 1.442695, %v1110_v36 }
 0x381   : > { %v1397_v47 = vpop.permute.xlu1 %1396 }
 0x382   : > { %2915 = vpow2.f32 %v1124_v37 }
 0x383   : > { %2917 = vpow2.f32 %v1126_v38 }
 0x389   : > { %v1133_v39 = vpop.xlane.xlu0 %1132 }
 0x38a   : > { %2919 = vrcp.f32 %v1133_v39 }
 0x38c   : > { %v2916_v41 = vpop.eup %2915 }
 0x38d   : > { %v1146_v42 = vsel %vm473_vm3, %v2916_v41, 0.0  ;;  %v3225_v43 = vpop.eup %2917 }
 0x38e   : > { %1147 = vadd.xlane.f32.xlu1 %v1146_v42  ;;  %1144 = vadd.xlane.f32.xlu0 %v1143_v20  ;;  %v1149_v44 = vsel %vm473_vm3, %v3225_v43, 0.0 }
 0x392   : > { %1150 = vadd.xlane.f32.xlu0 %v1149_v44 }
 0x394   : > { %v2920_v45 = vpop.eup %2919 }
 0x395   : > { %v1161_v46 = vmul.f32 %v2920_v45, %v2904_v62 }
 0x397   : > { %2709 = vmatmul.mubr.msk.f32.vlgmr.msra.gmra.mrb[8].mxu1 %vm473_vm3, %v1161_v46 }
 0x398   : > { %2717 = vmatpush3.msra.mxu1 %v1397_v47  ;;  %2718 = vmatprep.mubr.msk.f32.mxu1 %vm3000_vm2, %v2997_v16 }
 0x399   : > { %2726 = vmatprep.subr.mxu1 %v2997_v16 }
 0x39f   : > { %1700 = vrot.lane.b32.xlu1 %v3130_v24, %s3003_s11 }
 0x3a8   : > { %1624 = vrot.lane.b32.xlu0 %v3132_v25, %s3003_s11 }
 0x3b2   : > { %v1130_v48 = vpop.xlane.xlu1 %1129 }
 0x3b3   : > { %2921 = vrcp.f32 %v1130_v48 }
 0x3b6   : > { %v1549_v51 = vpop.permute.xlu1 %1548 }
 0x3bd   : > { %v2922_v49 = vpop.eup %2921 }
 0x3be   : > { %v1160_v50 = vmul.f32 %v2922_v49, %v3204_v3 }
 0x3c0   : > { %2704 = vmatmul.mubr.msk.f32.vlgmr.msra.gmra.mrb[10].mxu0 %vm473_vm3, %v1160_v50 }
 0x3c1   : > { %2712 = vmatpush3.msra.mxu0 %v1321_v31  ;;  %2713 = vmatprep.mubr.msk.f32.mxu0 %vm3000_vm2, %v2997_v16 }
 0x3c2   : > { %2721 = vmatprep.subr.mxu0 %v2997_v16 }
 0x3e6   : > { %v1139_v52 = vpop.xlane.xlu0 %1138 }
 0x3e7   : > { %2923 = vrcp.f32 %v1139_v52  ;;  %v2158_v52 = vld [vmem:[%s3076_s13 + $0x8] sm:$0xff] }
 0x3ea   : > { %v1136_v24 = vpop.xlane.xlu1 %1135  ;;  %v1473_v57 = vpop.permute.xlu0 %1472 }
 0x3eb   : > { %2925 = vrcp.f32 %v1136_v24 }
 0x3ee   : > { %v1142_v53 = vpop.xlane.xlu1 %1141 }
 0x3ef   : > { %2927 = vrcp.f32 %v1142_v53  ;;  %v2159_v53 = vld [vmem:[%s3076_s13 + $0x10] sm:$0xff] }
 0x3f1   : > { %v2924_v25 = vpop.eup %2923 }
 0x3f2   : > { %v1163_v54 = vmul.f32 %v2924_v25, %v2908_v23  ;;  %v2160_v25 = vld [vmem:[%s3076_s13 + $0x18] sm:$0xff] }
 0x3f4   : > { %2719 = vmatmul.mubr.msk.f32.vlgmr.msra.gmra.mrb[10].mxu1 %vm473_vm3, %v1163_v54  ;;  %v2819_v54 = vpack.c.bf16 %v2160_v25, %v2159_v53 }
 0x3f5   : > { %v2926_v55 = vpop.eup %2925  ;;  %2727 = vmatpush3.msra.mxu1 %v1549_v51  ;;  %2728 = vmatprep.mubr.msk.f32.mxu1 %vm3000_vm2, %v2997_v16  ;;  %v2157_v51 = vld [vmem:[%s3076_s13] sm:$0xff] }
 0x3f6   : > { %v1162_v56 = vmul.f32 %v2926_v55, %v2910_v22  ;;  %2736 = vmatprep.subr.mxu1 %v2997_v16  ;;  %v2815_v24 = vpack.c.bf16 %v2158_v52, %v2157_v51  ;;  %v2248_v55 = vld [vmem:[%s3081_s16] sm:$0xff] }
 0x3f8   : > { %2714 = vmatmul.mubr.msk.f32.vlgmr.msra.gmra.mrb[12].mxu0 %vm473_vm3, %v1162_v56  ;;  %v2249_v56 = vld [vmem:[%s3081_s16 + $0x8] sm:$0xff] }
 0x3f9   : > { %v2928_v58 = vpop.eup %2927  ;;  %2722 = vmatpush3.msra.mxu0 %v1473_v57  ;;  %2723 = vmatprep.mubr.msk.f32.mxu0 %vm3000_vm2, %v2997_v16  ;;  %v2250_v57 = vld [vmem:[%s3081_s16 + $0x10] sm:$0xff] }
 0x3fa   : > { %v1164_v59 = vmul.f32 %v2928_v58, %v3213_v29  ;;  %2731 = vmatprep.subr.mxu0 %v2997_v16  ;;  %v2823_v58 = vpack.c.bf16 %v2249_v56, %v2248_v55 }
 0x3fc   : > { %2724 = vmatmul.mubr.msk.f32.vlgmr.msra.gmra.mrb[14].mxu0 %vm473_vm3, %v1164_v59  ;;  %v2251_v59 = vld [vmem:[%s3081_s16 + $0x18] sm:$0xff] }
 0x3fd   : > { %2733 = vmatprep.mubr.msk.f32.mxu0 %vm3000_vm2, %v2997_v16 }
 0x41b   : > { %v1148_v60 = vpop.xlane.xlu1 %1147  ;;  %v1145_v61 = vpop.xlane.xlu0 %1144 }
 0x41c   : > { %2929 = vrcp.f32 %v1148_v60  ;;  %v2827_v60 = vpack.c.bf16 %v2251_v59, %v2250_v57 }
 0x41d   : > { %2931 = vrcp.f32 %v1145_v61  ;;  %v2252_v61 = vld [vmem:[%s3081_s16 + $0x20] sm:$0xff] }
 0x41f   : > { %v1151_v62 = vpop.xlane.xlu0 %1150  ;;  %v1701_v5 = vpop.permute.xlu1 %1700 }
 0x420   : > { %2933 = vrcp.f32 %v1151_v62  ;;  %v2253_v62 = vld [vmem:[%s3081_s16 + $0x28] sm:$0xff] }
 0x423   : > { %v1625_v0 = vpop.permute.xlu0 %1624 }
 0x424   : > { %2732 = vmatpush3.msra.mxu0 %v1625_v0  ;;  %v2254_v0 = vld [vmem:[%s3081_s16 + $0x30] sm:$0xff] }
 0x425   : > { %2741 = vmatprep.subr.mxu0 %v1776_v63 }
 0x426   : > { %v2930_v1 = vpop.eup %2929 }
 0x427   : > { %v2932_v2 = vpop.eup %2931  ;;  %v1166_v3 = vmul.f32 %v2930_v1, %v2916_v41  ;;  %v2255_v1 = vld [vmem:[%s3081_s16 + $0x38] sm:$0xff] }
 0x428   : > { %v1165_v4 = vmul.f32 %v2932_v2, %v3220_v40  ;;  %v2835_v2 = vpack.c.bf16 %v2255_v1, %v2254_v0 }
 0x429   : > { %2734 = vmatmul.mubr.msk.f32.vlgmr.msra.gmra.mrb[16].mxu0 %vm473_vm3, %v1166_v3  ;;  %v2256_v3 = vld [vmem:[%s3081_s16 + $0x40] sm:$0xff] }
 0x42a   : > { %2729 = vmatmul.mubr.msk.f32.vlgmr.msra.gmra.mrb[12].mxu1 %vm473_vm3, %v1165_v4  ;;  %2742 = vmatpush3.msra.mxu0 %v1776_v63  ;;  %v2934_v6 = vpop.eup %2933  ;;  %v2831_v63 = vpack.c.bf16 %v2253_v62, %v2252_v61  ;;  %v2257_v4 = vld [vmem:[%s3081_s16 + $0x48] sm:$0xff] }
 0x42b   : > { %2737 = vmatpush3.msra.mxu1 %v1701_v5  ;;  %2738 = vmatprep.mubr.msk.f32.mxu1 %vm3000_vm2, %v2997_v16  ;;  %v1167_v8 = vmul.f32 %v2934_v6, %v3225_v43  ;;  %v2839_v5 = vpack.c.bf16 %v2257_v4, %v2256_v3  ;;  %v2258_v6 = vld [vmem:[%s3081_s16 + $0x50] sm:$0xff] }
 0x42c   : > { %2746 = vmatprep.subr.mxu0 %v1777_v10  ;;  %2824 = vmatprep.subr.bf16.mxu1 %v2823_v58 }
 0x42e   : > { %2739 = vmatmul.mubr.msk.f32.vlgmr.msra.gmra.mrb[14].mxu1 %vm473_vm3, %v1167_v8  ;;  %v2259_v8 = vld [vmem:[%s3081_s16 + $0x58] sm:$0xff] }
 0x42f   : > { %2826 = vmatpush3.bf16.msra.mxu1 %v2823_v58 }
 0x430   : > { %2828 = vmatprep.subr.bf16.mxu1 %v2827_v60 }
 0x433   : > { %2830 = vmatpush3.bf16.msra.mxu1 %v2827_v60 }
 0x434   : > { %2832 = vmatprep.subr.bf16.mxu1 %v2831_v63 }
 0x437   : > { %2834 = vmatpush3.bf16.msra.mxu1 %v2831_v63 }
 0x438   : > { %2836 = vmatprep.subr.bf16.mxu1 %v2835_v2 }
 0x43b   : > { %2838 = vmatpush3.bf16.msra.mxu1 %v2835_v2 }
 0x43c   : > { %2840 = vmatprep.subr.bf16.mxu1 %v2839_v5 }
 0x43f   : > { %2842 = vmatpush3.bf16.msra.mxu1 %v2839_v5  ;;  %v2373_v5 = vsub.s32 4, %v3101_v11 }
 0x46a   : > { %v1316_v12 = vpop.f32.mrb[8].mxu1 }
 0x46b   : > { %v2710_v14 = vpop.f32.mrb[9].mxu1 }
 0x46c   : > { %v2261_v14 = vld [vmem:[%s3081_s16 + $0x68] sm:$0xff] }
 0x493   : > { %v1240_v15 = vpop.f32.mrb[10].mxu0 }
 0x494   : > { %v2705_v17 = vpop.f32.mrb[11].mxu0  ;;  %2743 = vmatprep.mubr.msk.f32.mxu0 %vm473_vm3, %v1240_v15 }
 0x495   : > { %2744 = vmatmul.mubr.msk.f32.vlgmr.msra.gmra.mrb[18].mxu0 %vm473_vm3, %v1316_v12  ;;  %v2260_v12 = vld [vmem:[%s3081_s16 + $0x60] sm:$0xff] }
 0x496   : > { %2747 = vmatpush3.msra.mxu0 %v1777_v10  ;;  %v2843_v10 = vpack.c.bf16 %v2259_v8, %v2258_v6  ;;  %v2847_v15 = vpack.c.bf16 %v2261_v14, %v2260_v12  ;;  %v2379_v6 = vsub.s32 5, %v3101_v11  ;;  %v2374_v8 = vrot.slane %v3104_v13, %v2373_v5 }
 0x497   : > { %2751 = vmatprep.subr.mxu0 %v1778_v18 }
 0x498   : > { %2844 = vmatprep.subr.bf16.mxu1 %v2843_v10  ;;  %v2380_v14 = vrot.slane %v3104_v13, %v2379_v6 }
 0x499   : > { %2846 = vmatpush3.bf16.msra.mxu1 %v2843_v10 }
 0x49a   : > { %2848 = vmatprep.subr.bf16.mxu1 %v2847_v15 }
 0x49d   : > { %2850 = vmatpush3.bf16.msra.mxu1 %v2847_v15 }
 0x4c7   : > { %v1468_v19 = vpop.f32.mrb[10].mxu1 }
 0x4c8   : > { %v2720_v16 = vpop.f32.mrb[11].mxu1 }
 0x4cb   : > { %v1392_v21 = vpop.f32.mrb[12].mxu0 }
 0x4cc   : > { %v2715_v23 = vpop.f32.mrb[13].mxu0  ;;  %2748 = vmatprep.mubr.msk.f32.mxu0 %vm473_vm3, %v1392_v21 }
 0x4cd   : > { %2749 = vmatmul.mubr.msk.f32.vlgmr.msra.gmra.mrb[18].mxu0 %vm473_vm3, %v1468_v19 }
 0x4ce   : > { %2752 = vmatpush3.msra.mxu0 %v1778_v18 }
 0x4cf   : > { %v1544_v27 = vpop.f32.mrb[14].mxu0  ;;  %2756 = vmatprep.subr.mxu0 %v1779_v26 }
 0x4d0   : > { %v2725_v22 = vpop.f32.mrb[15].mxu0  ;;  %2753 = vmatprep.mubr.msk.f32.mxu0 %vm473_vm3, %v1544_v27  ;;  %v2153_v27 = vsub.s32 3, %v3101_v11 }
 0x4fc   : > { %v1696_v28 = vpop.f32.mrb[16].mxu0 }
 0x4fd   : > { %v1620_v29 = vpop.f32.mrb[12].mxu1  ;;  %v2735_v30 = vpop.f32.mrb[17].mxu0 }
 0x4fe   : > { %v2730_v31 = vpop.f32.mrb[13].mxu1  ;;  %2754 = vmatmul.mubr.msk.f32.vlgmr.msra.gmra.mrb[18].mxu0 %vm473_vm3, %v1620_v29  ;;  %v2154_v30 = vrot.slane %v3104_v13, %v2153_v27 }
 0x4ff   : > { %2757 = vmatpush3.msra.mxu0 %v1779_v26  ;;  %2758 = vmatprep.mubr.msk.f32.mxu0 %vm473_vm3, %v1696_v28  ;;  %v2147_v26 = vsub.s32 2, %v3101_v11 }
 0x500   : > { %2816 = vmatprep.subr.bf16.mxu0 %v2815_v24 }
 0x501   : > { %v1772_v32 = vpop.f32.mrb[14].mxu1  ;;  %v2148_v22 = vrot.slane %v3104_v13, %v2147_v26 }
 0x502   : > { %v2740_v33 = vpop.f32.mrb[15].mxu1 }
 0x506   : > { %2759 = vmatmul.mubr.msk.f32.vlgmr.msra.gmra.mrb[18].mxu0 %vm473_vm3, %v1772_v32 }
 0x507   : > { %2818 = vmatpush3.bf16.msra.mxu0 %v2815_v24 }
 0x508   : > { %2820 = vmatprep.subr.bf16.mxu0 %v2819_v54 }
 0x50b   : > { %2822 = vmatpush3.bf16.msra.mxu0 %v2819_v54 }
 0x5d9   : > { %v2760_v36 = vpop.f32.mrb[18].mxu0 }
 0x5da   : > { %v2855_v37 = vadd.f32 %v2760_v36, %v1864_v35  ;;  %v2105_v38 = vpop.f32.mrb[19].mxu0 }
 0x5db   : > { %v2856_v39 = vadd.f32 %v2105_v38, %v1864_v35  ;;  %v2263_v38 = vld [vmem:[%s3081_s16 + $0x78] sm:$0xff] }
 0x5dc   : > { %v2117_v40 = vadd.f32 %v2855_v37, %v3097_v9  ;;  %v2262_v37 = vld [vmem:[%s3081_s16 + $0x70] sm:$0xff] }
 0x5dd   : > { %v2116_v41 = vadd.f32 %v2856_v39, %v3093_v7  ;;  %v2851_v39 = vpack.c.bf16 %v2263_v38, %v2262_v37 }
 0x5de   : > { %v2121_v42 = vsel %vm375_vm1, %v2117_v40, 0.0 }
 0x5df   : > { %2122 = vadd.xlane.f32.xlu1 %v2121_v42  ;;  %v2118_v20 = vsel %vm375_vm1, %v2116_v41, 0.0  ;;  %2852 = vmatprep.subr.bf16.mxu1 %v2851_v39 }
 0x5e0   : > { %2119 = vadd.xlane.f32.xlu0 %v2118_v20  ;;  %2854 = vmatpush3.bf16.msra.mxu1 %v2851_v39 }
 0x66c   : > { %v2123_v43 = vpop.xlane.xlu1 %2122 }
 0x66d   : > { %v2126_v44 = vmul.f32 0.03125, %v2123_v43  ;;  %v2120_v45 = vpop.xlane.xlu0 %2119 }
 0x66e   : > { %v2125_v46 = vmul.f32 0.03125, %v2120_v45 }
 0x66f   : > { %v3279_v47 = vsub.f32 %v2117_v40, %v2126_v44  ;;  %v2163_v40 = vsub.s32 6, %v3101_v11 }
 0x670   : > { %v3281_v48 = vsub.f32 %v2116_v41, %v2125_v46 }
 0x671   : > { %v2130_v49 = vmul.f32 %v3279_v47, %v3279_v47  ;;  %v2164_v41 = vrot.slane %v3104_v13, %v2163_v40 }
 0x672   : > { %v2129_v7 = vmul.f32 %v3281_v48, %v3281_v48 }
 0x673   : > { %v2134_v50 = vsel %vm375_vm1, %v2130_v49, 0.0 }
 0x674   : > { %v2131_v9 = vsel %vm375_vm1, %v2129_v7, 0.0 }
 0x675   : > { %2132 = vadd.xlane.f32.xlu0 %v2131_v9 }
 0x679   : > { %2135 = vadd.xlane.f32.xlu0 %v2134_v50 }
 0x702   : > { %v2133_v17 = vpop.xlane.xlu0 %2132 }
 0x703   : > { %v2137_v18 = vmul.f32 0.03125, %v2133_v17 }
 0x705   : > { %v2139_v19 = vadd.f32 1e-05, %v2137_v18 }
 0x706   : > { %v2136_v16 = vpop.xlane.xlu0 %2135 }
 0x707   : > { %2935 = vrsqrt.f32 %v2139_v19  ;;  %v2138_v21 = vmul.f32 0.03125, %v2136_v16 }
 0x709   : > { %v2140_v23 = vadd.f32 1e-05, %v2138_v21 }
 0x70b   : > { %2937 = vrsqrt.f32 %v2140_v23 }
 0x711   : > { %v2936_v28 = vpop.eup %2935 }
 0x712   : > { %v2143_v29 = vmul.f32 %v2936_v28, %v3281_v48 }
 0x714   : > { %v2149_v31 = vmul.f32 %v2148_v22, %v2143_v29 }
 0x715   : > { %v2938_v32 = vpop.eup %2937 }
 0x716   : > { %v2144_v33 = vmul.f32 %v2938_v32, %v3279_v47  ;;  %v2155_v34 = vadd.f32 %v2154_v30, %v2149_v31  ;;  %v2266_v47 = vsub.s32 7, %v3101_v11 }
 0x718   : > { %v2150_v35 = vmul.f32 %v2148_v22, %v2144_v33  ;;  %2769 = vmatprep.mubr.msk.f32.mxu0 %vm375_vm1, %v2155_v34  ;;  %v2267_v48 = vrot.slane %v3104_v13, %v2266_v47 }
 0x71a   : > { %v2156_v36 = vadd.f32 %v2154_v30, %v2150_v35 }
 0x71c   : > { %2770 = vmatmul.mubr.msk.f32.vlgmr.msra.gmra.mrb[20].mxu0 %vm375_vm1, %v2156_v36 }
 0x7ef   : > { %v2771_v42 = vpop.f32.mrb[20].mxu0 }
 0x7f0   : > { %v2243_v20 = vadd.f32 %v2771_v42, %v2164_v41  ;;  %v2237_v43 = vpop.f32.mrb[21].mxu0 }
 0x7f1   : > { %v2238_v44 = vadd.f32 %v2237_v43, %v2164_v41 }
 0x7f2   : > { %v2247_v46 = vmax.f32 %v2243_v20, 0.0 }
 0x7f3   : > { %v2246_v45 = vmax.f32 %v2238_v44, 0.0 }
 0x7f5   : > { %2804 = vmatprep.mubr.f32.mxu1 %v2246_v45 }
 0x7f6   : > { %2805 = vmatmul.mubr.f32.vlgmr.msra.gmra.mrb[16].mxu1 %v2247_v46 }
 0x8c9   : > { %v2806_v7 = vpop.f32.mrb[16].mxu1 }
 0x8ca   : > { %v2340_v9 = vadd.f32 %v2806_v7, %v2267_v48  ;;  %v2334_v49 = vpop.f32.mrb[17].mxu1 }
 0x8cb   : > { %v2335_v50 = vadd.f32 %v2334_v49, %v2267_v48 }
 0x8cc   : > { %v2344_v51 = vadd.f32 %v2340_v9, %v2156_v36 }
 0x8cd   : > { %v2343_v52 = vadd.f32 %v2335_v50, %v2155_v34 }
 0x8ce   : > { %v2348_v24 = vsel %vm375_vm1, %v2344_v51, 0.0 }
 0x8cf   : > { %2349 = vadd.xlane.f32.xlu0 %v2348_v24  ;;  %v2345_v53 = vsel %vm375_vm1, %v2343_v52, 0.0 }
 0x8d0   : > { %2346 = vadd.xlane.f32.xlu1 %v2345_v53 }
 0x95c   : > { %v2350_v25 = vpop.xlane.xlu0 %2349 }
 0x95d   : > { %v2352_v54 = vmul.f32 0.03125, %v2350_v25  ;;  %v2347_v55 = vpop.xlane.xlu1 %2346 }
 0x95e   : > { %v2351_v56 = vmul.f32 0.03125, %v2347_v55 }
 0x95f   : > { %v2354_v57 = vsub.f32 %v2344_v51, %v2352_v54 }
 0x960   : > { %v2353_v58 = vsub.f32 %v2343_v52, %v2351_v56 }
 0x961   : > { %v2356_v59 = vmul.f32 %v2354_v57, %v2354_v57 }
 0x962   : > { %v2355_v60 = vmul.f32 %v2353_v58, %v2353_v58 }
 0x963   : > { %v2360_v61 = vsel %vm375_vm1, %v2356_v59, 0.0 }
 0x964   : > { %2361 = vadd.xlane.f32.xlu0 %v2360_v61  ;;  %v2357_v62 = vsel %vm375_vm1, %v2355_v60, 0.0 }
 0x965   : > { %2358 = vadd.xlane.f32.xlu1 %v2357_v62 }
 0x9f1   : > { %v2362_v63 = vpop.xlane.xlu0 %2361 }
 0x9f2   : > { %v2364_v0 = vmul.f32 0.03125, %v2362_v63  ;;  %v2359_v1 = vpop.xlane.xlu1 %2358 }
 0x9f3   : > { %v2363_v2 = vmul.f32 0.03125, %v2359_v1 }
 0x9f4   : > { %v2366_v3 = vadd.f32 1e-05, %v2364_v0 }
 0x9f5   : > { %v2365_v4 = vadd.f32 1e-05, %v2363_v2 }
 0x9f6   : > { %2939 = vrsqrt.f32 %v2366_v3 }
 0x9f7   : > { %2941 = vrsqrt.f32 %v2365_v4 }
 0xa00   : > { %v2940_v10 = vpop.eup %2939 }
 0xa01   : > { %v2942_v12 = vpop.eup %2941  ;;  %v2370_v15 = vmul.f32 %v2940_v10, %v2354_v57 }
 0xa02   : > { %v2369_v17 = vmul.f32 %v2942_v12, %v2353_v58  ;;  %2388 = sbr.rel (%p2567_p6) target bundleno = 2569 (0xa09), region = 52 }
 0xa03   : > { %v2376_v18 = vmul.f32 %v2374_v8, %v2370_v15 }
 0xa04   : > { %v2375_v19 = vmul.f32 %v2374_v8, %v2369_v17 }
 0xa05   : > { %v2382_v16 = vadd.f32 %v2380_v14, %v2376_v18 }
 0xa06   : > { %v2381_v21 = vadd.f32 %v2380_v14, %v2375_v19 }
 0xa07   : > { %2384 = vst.msk [vmem:[#allocation2 + $0x8] sm:$0xff] %vm375_vm1, %v2382_v16  ;;  %2390 = vst.msk [vmem:[#allocation3 + $0x8] sm:$0xff] (!%p2567_p6), %vm375_vm1, %v2382_v16 }
 0xa08   : > { %2383 = vst.msk [vmem:[#allocation2] sm:$0xff] %vm375_vm1, %v2381_v21  ;;  %2389 = vst.msk [vmem:[#allocation3] sm:$0xff] (!%p2567_p6), %vm375_vm1, %v2381_v21 }
 0xa09 PF: > { %p3336_p7 = scmp.eq.s32.totalorder %s2516_s24, 1  ;;  %s3004_s12 = smov [#allocation3]  }
 0xa0a   : > { %s2400_s13 = sshll.u32 %s3004_s12, 4  ;;  %s2401_s13 = int_to_ptr.vmem [resolvable:$true] %s2400_s13 }
 0xa0b   : > { %s2943_s14 = scalar_lea.vmem %s2401_s13, 256  ;;  %p2950_p11 = scmp.lt.s32.totalorder %s2401_s13, %s2401_s13 }
 0xa0c   : > { %p2944_p8 = scmp.ne.s32.totalorder %s2401_s13, %s2943_s14  ;;  %p2951_p12 = scmp.lt.s32.totalorder %s2943_s14, %s2943_s14 }
 0xa0e   : > { %p2945_p9 = pnand %p2944_p8, %p3336_p7  ;;  %p2952_p13 = por %p2951_p12, %p2950_p11 }
 0xa10   : > { %p2946_p10 = pneg %p2945_p9 }
 0xa12   : > { %p2953_p0 = pnand %p2952_p13, %p2946_p10 }
 0xa14   : > { %2956 = shalt.err (!%p2953_p0)
}
 0xa15   : > { %s2957_s24 = scalar_lea.hbm %s3377_s6, 256 }
 0xa16   : > { %p2958_p1 = scmp.ne.s32.totalorder %s3377_s6, %s2957_s24  ;;  %p2963_p4 = scmp.lt.u32.totalorder %s2957_s24, %s3377_s6 }
 0xa18   : > { %p2959_p2 = pnand %p2958_p1, %p3336_p7 }
 0xa1a   : > { %p2960_p3 = pneg %p2959_p2 }
 0xa1c   : > { %p2965_p5 = pnand %p2963_p4, %p2960_p3 }
 0xa1e   : > { %2968 = shalt.err (!%p2965_p5)
}
 0xa1f   : > { %s3005_s20 = smov 128   ;;  %s3006_s29 = smov 8  }
 0xa20   : > { %2864 = dma.vmem_to_hbm [thread:$0]  (%p3336_p7), %s2401_s13, 256, %s3377_s6, [#allocation4], %s3005_s20, %s3005_s20, %s3006_s29  }
 0xa21   : > { %2982 = dma.done.wait (%p3336_p7), [#allocation4], 256  }
 0xa22   : > { %2984 = vsyncadd (%p3336_p7), [#allocation4], 4294967040 }
 0xa23 PF: > { %s17_s23 = sadd.s32 1, %s2995_s23   ;;  %s3379_s21 = smov %s2991_s22 }
 0xa24   : > { %p14_p6 = scmp.ge.s32.totalorder %s17_s23, 4   ;;  %s3380_s22 = smov %s3382_s25 }
 0xa26   :  { %16 = sbr.rel (!%p14_p6) target bundleno = 2 (0x2), region = 95 }
 0xa2d   :  { %2416 = vsyncpa [#allocation4], 1 }
 0xa2e   :  { %2418 = vsyncpa [#allocation4 + $0x1], 1 }

</bundles_post_ra>
